<compile_context>
chip_gen: v5e
topology: v5e:2x2
jax: 0.10.0
libtpu: 0.0.40
codegen_flags: <defaults>
</compile_context>

<pallas_src>
from functools import partial

import jax
import jax.numpy as jnp
from jax import lax
from jax.experimental import pallas as pl
from jax.experimental.pallas import tpu as pltpu


# Neighbor offsets (dy, dx) in the exact order of the module's one-hot kernels.
_NEIGH8 = ((-1, -1), (-1, 0), (-1, 1), (0, -1), (0, 1), (1, -1), (1, 0), (1, 1))


def _vmem_cap_bytes():
    """~80% of this generation's physical VMEM (headroom for Mosaic scratch)."""
    cap = None
    try:
        info = pltpu.get_tpu_info()
        cap = getattr(info, "vmem_capacity_bytes", None)
    except Exception:
        cap = None
    if not cap:
        cap = 64 << 20  # conservative fallback: v7x physical VMEM per TensorCore
    return int(cap) * 4 // 5


def _pick_tb(bk, ndil, plane_in_bytes, plane_out_bytes, cap_bytes):
    """Largest divisor of B*K whose blocks fit comfortably; prefer >=2 grid steps."""
    out_target = 4 << 20
    best_any, best_par = 1, None
    for tb in range(1, bk + 1):
        if bk % tb:
            continue
        out_block = tb * 8 * plane_out_bytes
        # double-buffered in/out blocks + generous per-step temp estimate
        work = 2 * tb * (plane_in_bytes + 8 * plane_out_bytes) + 8 * tb * plane_in_bytes
        if out_block > out_target or work > cap_bytes:
            continue
        best_any = tb
        if (bk // tb) * ndil >= 2:      # keep both v7x TensorCores fed
            best_par = tb
    return best_par if best_par is not None else best_any


def _local_affinity_kernel(x_ref, o_ref, *, dilations, h_roll_ok, w_roll_ok):
    """One grid step: TB image planes x one dilation -> TB x 8 output planes."""
    x = x_ref[...]                      # (TB, H, W)
    tb, hh, ww = x.shape

    top = x[:, 0:1, :]                  # (TB, 1, W)
    bot = x[:, hh - 1:hh, :]            # (TB, 1, W)
    # Thin clamp masks (broadcast inside jnp.where) instead of full int32 planes.
    row = lax.broadcasted_iota(jnp.int32, (1, hh, 1), 1) if h_roll_ok else None
    col = lax.broadcasted_iota(jnp.int32, (1, 1, ww), 2) if w_roll_ok else None

    def shift_h(off):
        # result[b, h, w] = x[b, clamp(h + off, 0, H-1), w]   (replicate clamp)
        if off == 0:
            return x
        if abs(off) >= hh:              # degenerate clamp (torch would raise here)
            return jnp.broadcast_to(bot if off > 0 else top, x.shape)
        if h_roll_ok:
            r = pltpu.roll(x, (-off) % hh, 1)          # XLU sublane rotate
            if off > 0:
                return jnp.where(row < hh - off, r, bot)
            return jnp.where(row >= -off, r, top)
        if off > 0:
            pad = jnp.broadcast_to(bot, (tb, off, ww))
            return jnp.concatenate([x[:, off:, :], pad], axis=1)
        k = -off
        pad = jnp.broadcast_to(top, (tb, k, ww))
        return jnp.concatenate([pad, x[:, :hh - k, :]], axis=1)

    def shift_w(a, off):
        # result[b, h, w] = a[b, h, clamp(w + off, 0, W-1)]
        if off == 0:
            return a
        left = a[:, :, 0:1]
        right = a[:, :, ww - 1:ww]
        if abs(off) >= ww:
            return jnp.broadcast_to(right if off > 0 else left, a.shape)
        if w_roll_ok:
            r = pltpu.roll(a, (-off) % ww, 2)          # XLU lane rotate
            if off > 0:
                return jnp.where(col < ww - off, r, right)
            return jnp.where(col >= -off, r, left)
        if off > 0:
            pad = jnp.broadcast_to(right, (tb, hh, off))
            return jnp.concatenate([a[:, :, off:], pad], axis=2)
        k = -off
        pad = jnp.broadcast_to(left, (tb, hh, k))
        return jnp.concatenate([pad, a[:, :, :ww - k]], axis=2)

    def compute_dilation(d):
        # Share the sublane (H) shift across the three column offsets.
        up = shift_h(-d)
        dn = shift_h(d)
        taps = (
            shift_w(up, -d), up, shift_w(up, d),   # (-d,-d) (-d, 0) (-d,+d)
            shift_w(x, -d), shift_w(x, d),         # ( 0,-d)         ( 0,+d)
            shift_w(dn, -d), dn, shift_w(dn, d),   # (+d,-d) (+d, 0) (+d,+d)
        )
        for n, t in enumerate(taps):
            o_ref[:, n] = (x - t).astype(o_ref.dtype)

    if len(dilations) == 1:
        compute_dilation(dilations[0])
    else:
        d_idx = pl.program_id(1)
        for j, d in enumerate(dilations):
            pl.when(d_idx == j)(partial(compute_dilation, d))


def local_affinity(x, dilations=(1,), out_dtype=None):
    """Pallas equivalent of LocalAffinity.forward: (B,K,H,W) -> (B,K,8*D,H,W)."""
    dilations = tuple(int(d) for d in dilations)
    ndil = len(dilations)
    B, K, H, W = x.shape
    N = 8 * ndil
    out_dtype = x.dtype if out_dtype is None else jnp.dtype(out_dtype)

    BK = B * K
    x2 = x.reshape(BK, H, W)            # leading-dims reshape: free, no HBM pass

    in_item = jnp.dtype(x.dtype).itemsize
    out_item = jnp.dtype(out_dtype).itemsize
    plane_in = H * W * in_item
    plane_out = H * W * out_item

    cap = _vmem_cap_bytes()
    TB = _pick_tb(BK, ndil, plane_in, plane_out, cap)
    nb = BK // TB

    work = 2 * TB * (plane_in + 8 * plane_out) + 8 * TB * plane_in
    vmem_limit = int(min(max(2 * work, 32 << 20), cap))

    h_roll_ok = (H % 8 == 0)
    w_roll_ok = (W % 128 == 0)

    out = pl.pallas_call(
        partial(_local_affinity_kernel, dilations=dilations,
                h_roll_ok=h_roll_ok, w_roll_ok=w_roll_ok),
        out_shape=jax.ShapeDtypeStruct((BK, N, H, W), out_dtype),
        grid=(nb, ndil),
        in_specs=[pl.BlockSpec((TB, H, W), lambda i, j: (i, 0, 0))],
        out_specs=pl.BlockSpec((TB, 8, H, W), lambda i, j: (i, j, 0, 0)),
        compiler_params=pltpu.CompilerParams(
            dimension_semantics=("parallel", "parallel"),
            vmem_limit_bytes=vmem_limit,
        ),
    )(x2)

    return out.reshape(B, K, N, H, W)   # free reshape; no crop / extra HBM pass


def local_affinity_reference(x, dilations):
    """Pure-JAX reference identical to the PyTorch module (replicate pad + dilated conv).

    Fixed from the previous revision: dilation d samples neighbors at +-d (oy*d,
    ox*d), exactly like F.conv2d with a 3x3 one-hot kernel and dilation=d.
    """
    B, K, H, W = x.shape
    planes = []
    for d in dilations:
        xp = jnp.pad(x, ((0, 0), (0, 0), (d, d), (d, d)), mode="edge")
        for oy, ox in _NEIGH8:
            tap = xp[:, :, d + oy * d:d + oy * d + H, d + ox * d:d + ox * d + W]
            planes.append(x - tap)
    return jnp.stack(planes, axis=2)


if __name__ == "__main__":
    # NOTE: the module's `weight_check` equality assert is a torch-buffer sanity
    # check with no kernel-side equivalent; the one-hot conv kernels themselves
    # are folded analytically into the clamped neighbor shifts above.
    key = jax.random.PRNGKey(0)
    k1, k2 = jax.random.split(key)

    # Lane-aligned shape (W multiple of 128): roll + dense-store fast path.
    x_big = jax.random.normal(k1, (2, 4, 16, 128), dtype=jnp.float32)
    # Unaligned narrow shape: full-extent BlockSpec + masked stores (no pad/crop).
    x_small = jax.random.normal(k2, (2, 3, 13, 16), dtype=jnp.float32)

    cases = [
        (x_big, (1,)),          # module default dilations=[1]
        (x_big, (1, 2, 4)),
        (x_small, (1, 2, 4)),
    ]
    for xi, dils in cases:
        out = jax.block_until_ready(local_affinity(xi, dilations=dils))
        B, K, H, W = xi.shape
        assert out.shape == (B, K, 8 * len(dils), H, W)
        assert bool(jnp.all(jnp.isfinite(out)))
        ref = local_affinity_reference(xi, dils)
        err = float(jnp.max(jnp.abs(out - ref)))
        assert err <= 1e-5, f"mismatch vs reference: max abs err = {err}"
    print("KERNEL_OK")
</pallas_src>

<mosaic_0001>
module attributes {stable_mosaic.version = 11 : i64} {
  func.func @_local_affinity_kernel(%arg0: i32, %arg1: i32, %arg2: memref<4x16x128xf32, #tpu.memory_space<vmem>>, %arg3: memref<4x8x16x128xf32, #tpu.memory_space<vmem>>) attributes {dimension_semantics = [#tpu.dimension_semantics<parallel>, #tpu.dimension_semantics<parallel>], iteration_bounds = array<i64: 2, 1>, scalar_prefetch = 0 : i64, scratch_operands = 0 : i64, tpu.core_type = #tpu.core_type<tc>, window_params = [{transform_indices = @transform_0, window_bounds = array<i64: 4, 16, 128>}, {transform_indices = @transform_1, window_bounds = array<i64: 4, 8, 16, 128>}]} {
    %c0 = arith.constant 0 : index
    %c0_0 = arith.constant 0 : index
    %c0_1 = arith.constant 0 : index
    %0 = vector.load %arg2[%c0, %c0_0, %c0_1] : memref<4x16x128xf32, #tpu.memory_space<vmem>>, vector<4x16x128xf32>
    %1 = vector.extract_strided_slice %0 {offsets = [0, 0, 0], sizes = [4, 1, 128], strides = [1, 1, 1]} : vector<4x16x128xf32> to vector<4x1x128xf32>
    %2 = vector.extract_strided_slice %0 {offsets = [0, 15, 0], sizes = [4, 1, 128], strides = [1, 1, 1]} : vector<4x16x128xf32> to vector<4x1x128xf32>
    %3 = tpu.iota {dimensions = array<i32: 1>} : vector<1x16x1xi32>
    %4 = tpu.iota {dimensions = array<i32: 2>} : vector<1x1x128xi32>
    %c1_i32 = arith.constant 1 : i32
    %5 = tpu.dynamic_rotate %0 by %c1_i32 dim 1 : vector<4x16x128xf32>, i32 -> vector<4x16x128xf32>
    %c1_i32_2 = arith.constant 1 : i32
    %6 = vector.broadcast %c1_i32_2 : i32 to vector<1x16x1xi32>
    %7 = arith.cmpi sge, %3, %6 : vector<1x16x1xi32>
    %8 = vector.shape_cast %7 : vector<1x16x1xi1> to vector<1x16x1xi1>
    %9 = vector.broadcast %8 : vector<1x16x1xi1> to vector<4x16x128xi1>
    %10 = vector.shape_cast %1 : vector<4x1x128xf32> to vector<4x1x128xf32>
    %11 = vector.broadcast %10 : vector<4x1x128xf32> to vector<4x16x128xf32>
    %12 = arith.select %9, %5, %11 : vector<4x16x128xi1>, vector<4x16x128xf32>
    %c15_i32 = arith.constant 15 : i32
    %13 = tpu.dynamic_rotate %0 by %c15_i32 dim 1 : vector<4x16x128xf32>, i32 -> vector<4x16x128xf32>
    %c15_i32_3 = arith.constant 15 : i32
    %14 = vector.broadcast %c15_i32_3 : i32 to vector<1x16x1xi32>
    %15 = arith.cmpi slt, %3, %14 : vector<1x16x1xi32>
    %16 = vector.shape_cast %15 : vector<1x16x1xi1> to vector<1x16x1xi1>
    %17 = vector.broadcast %16 : vector<1x16x1xi1> to vector<4x16x128xi1>
    %18 = vector.shape_cast %2 : vector<4x1x128xf32> to vector<4x1x128xf32>
    %19 = vector.broadcast %18 : vector<4x1x128xf32> to vector<4x16x128xf32>
    %20 = arith.select %17, %13, %19 : vector<4x16x128xi1>, vector<4x16x128xf32>
    %21 = vector.extract_strided_slice %12 {offsets = [0, 0, 0], sizes = [4, 16, 1], strides = [1, 1, 1]} : vector<4x16x128xf32> to vector<4x16x1xf32>
    %c1_i32_4 = arith.constant 1 : i32
    %22 = tpu.dynamic_rotate %12 by %c1_i32_4 dim 2 : vector<4x16x128xf32>, i32 -> vector<4x16x128xf32>
    %c1_i32_5 = arith.constant 1 : i32
    %23 = vector.broadcast %c1_i32_5 : i32 to vector<1x1x128xi32>
    %24 = arith.cmpi sge, %4, %23 : vector<1x1x128xi32>
    %25 = vector.shape_cast %24 : vector<1x1x128xi1> to vector<1x1x128xi1>
    %26 = vector.broadcast %25 : vector<1x1x128xi1> to vector<4x16x128xi1>
    %27 = vector.shape_cast %21 : vector<4x16x1xf32> to vector<4x16x1xf32>
    %28 = vector.broadcast %27 : vector<4x16x1xf32> to vector<4x16x128xf32>
    %29 = arith.select %26, %22, %28 : vector<4x16x128xi1>, vector<4x16x128xf32>
    %30 = vector.extract_strided_slice %12 {offsets = [0, 0, 127], sizes = [4, 16, 1], strides = [1, 1, 1]} : vector<4x16x128xf32> to vector<4x16x1xf32>
    %c127_i32 = arith.constant 127 : i32
    %31 = tpu.dynamic_rotate %12 by %c127_i32 dim 2 : vector<4x16x128xf32>, i32 -> vector<4x16x128xf32>
    %c127_i32_6 = arith.constant 127 : i32
    %32 = vector.broadcast %c127_i32_6 : i32 to vector<1x1x128xi32>
    %33 = arith.cmpi slt, %4, %32 : vector<1x1x128xi32>
    %34 = vector.shape_cast %33 : vector<1x1x128xi1> to vector<1x1x128xi1>
    %35 = vector.broadcast %34 : vector<1x1x128xi1> to vector<4x16x128xi1>
    %36 = vector.shape_cast %30 : vector<4x16x1xf32> to vector<4x16x1xf32>
    %37 = vector.broadcast %36 : vector<4x16x1xf32> to vector<4x16x128xf32>
    %38 = arith.select %35, %31, %37 : vector<4x16x128xi1>, vector<4x16x128xf32>
    %39 = vector.extract_strided_slice %0 {offsets = [0, 0, 0], sizes = [4, 16, 1], strides = [1, 1, 1]} : vector<4x16x128xf32> to vector<4x16x1xf32>
    %c1_i32_7 = arith.constant 1 : i32
    %40 = tpu.dynamic_rotate %0 by %c1_i32_7 dim 2 : vector<4x16x128xf32>, i32 -> vector<4x16x128xf32>
    %c1_i32_8 = arith.constant 1 : i32
    %41 = vector.broadcast %c1_i32_8 : i32 to vector<1x1x128xi32>
    %42 = arith.cmpi sge, %4, %41 : vector<1x1x128xi32>
    %43 = vector.shape_cast %42 : vector<1x1x128xi1> to vector<1x1x128xi1>
    %44 = vector.broadcast %43 : vector<1x1x128xi1> to vector<4x16x128xi1>
    %45 = vector.shape_cast %39 : vector<4x16x1xf32> to vector<4x16x1xf32>
    %46 = vector.broadcast %45 : vector<4x16x1xf32> to vector<4x16x128xf32>
    %47 = arith.select %44, %40, %46 : vector<4x16x128xi1>, vector<4x16x128xf32>
    %48 = vector.extract_strided_slice %0 {offsets = [0, 0, 127], sizes = [4, 16, 1], strides = [1, 1, 1]} : vector<4x16x128xf32> to vector<4x16x1xf32>
    %c127_i32_9 = arith.constant 127 : i32
    %49 = tpu.dynamic_rotate %0 by %c127_i32_9 dim 2 : vector<4x16x128xf32>, i32 -> vector<4x16x128xf32>
    %c127_i32_10 = arith.constant 127 : i32
    %50 = vector.broadcast %c127_i32_10 : i32 to vector<1x1x128xi32>
    %51 = arith.cmpi slt, %4, %50 : vector<1x1x128xi32>
    %52 = vector.shape_cast %51 : vector<1x1x128xi1> to vector<1x1x128xi1>
    %53 = vector.broadcast %52 : vector<1x1x128xi1> to vector<4x16x128xi1>
    %54 = vector.shape_cast %48 : vector<4x16x1xf32> to vector<4x16x1xf32>
    %55 = vector.broadcast %54 : vector<4x16x1xf32> to vector<4x16x128xf32>
    %56 = arith.select %53, %49, %55 : vector<4x16x128xi1>, vector<4x16x128xf32>
    %57 = vector.extract_strided_slice %20 {offsets = [0, 0, 0], sizes = [4, 16, 1], strides = [1, 1, 1]} : vector<4x16x128xf32> to vector<4x16x1xf32>
    %c1_i32_11 = arith.constant 1 : i32
    %58 = tpu.dynamic_rotate %20 by %c1_i32_11 dim 2 : vector<4x16x128xf32>, i32 -> vector<4x16x128xf32>
    %c1_i32_12 = arith.constant 1 : i32
    %59 = vector.broadcast %c1_i32_12 : i32 to vector<1x1x128xi32>
    %60 = arith.cmpi sge, %4, %59 : vector<1x1x128xi32>
    %61 = vector.shape_cast %60 : vector<1x1x128xi1> to vector<1x1x128xi1>
    %62 = vector.broadcast %61 : vector<1x1x128xi1> to vector<4x16x128xi1>
    %63 = vector.shape_cast %57 : vector<4x16x1xf32> to vector<4x16x1xf32>
    %64 = vector.broadcast %63 : vector<4x16x1xf32> to vector<4x16x128xf32>
    %65 = arith.select %62, %58, %64 : vector<4x16x128xi1>, vector<4x16x128xf32>
    %66 = vector.extract_strided_slice %20 {offsets = [0, 0, 127], sizes = [4, 16, 1], strides = [1, 1, 1]} : vector<4x16x128xf32> to vector<4x16x1xf32>
    %c127_i32_13 = arith.constant 127 : i32
    %67 = tpu.dynamic_rotate %20 by %c127_i32_13 dim 2 : vector<4x16x128xf32>, i32 -> vector<4x16x128xf32>
    %c127_i32_14 = arith.constant 127 : i32
    %68 = vector.broadcast %c127_i32_14 : i32 to vector<1x1x128xi32>
    %69 = arith.cmpi slt, %4, %68 : vector<1x1x128xi32>
    %70 = vector.shape_cast %69 : vector<1x1x128xi1> to vector<1x1x128xi1>
    %71 = vector.broadcast %70 : vector<1x1x128xi1> to vector<4x16x128xi1>
    %72 = vector.shape_cast %66 : vector<4x16x1xf32> to vector<4x16x1xf32>
    %73 = vector.broadcast %72 : vector<4x16x1xf32> to vector<4x16x128xf32>
    %74 = arith.select %71, %67, %73 : vector<4x16x128xi1>, vector<4x16x128xf32>
    %75 = arith.subf %0, %29 : vector<4x16x128xf32>
    %c0_15 = arith.constant 0 : index
    %c0_16 = arith.constant 0 : index
    %c0_17 = arith.constant 0 : index
    %c0_18 = arith.constant 0 : index
    %76 = vector.load %arg3[%c0_15, %c0_16, %c0_17, %c0_18] : memref<4x8x16x128xf32, #tpu.memory_space<vmem>>, vector<4x1x16x128xf32>
    %77 = vector.shape_cast %76 : vector<4x1x16x128xf32> to vector<4x16x128xf32>
    %78 = vector.shape_cast %75 : vector<4x16x128xf32> to vector<4x1x16x128xf32>
    tpu.vector_store %arg3[%c0_15, %c0_16, %c0_17, %c0_18], %78 {strides = array<i32>} : memref<4x8x16x128xf32, #tpu.memory_space<vmem>>, vector<4x1x16x128xf32>,
    %79 = arith.subf %0, %12 : vector<4x16x128xf32>
    %c0_19 = arith.constant 0 : index
    %c1 = arith.constant 1 : index
    %c0_20 = arith.constant 0 : index
    %c0_21 = arith.constant 0 : index
    %80 = vector.load %arg3[%c0_19, %c1, %c0_20, %c0_21] : memref<4x8x16x128xf32, #tpu.memory_space<vmem>>, vector<4x1x16x128xf32>
    %81 = vector.shape_cast %80 : vector<4x1x16x128xf32> to vector<4x16x128xf32>
    %82 = vector.shape_cast %79 : vector<4x16x128xf32> to vector<4x1x16x128xf32>
    tpu.vector_store %arg3[%c0_19, %c1, %c0_20, %c0_21], %82 {strides = array<i32>} : memref<4x8x16x128xf32, #tpu.memory_space<vmem>>, vector<4x1x16x128xf32>,
    %83 = arith.subf %0, %38 : vector<4x16x128xf32>
    %c0_22 = arith.constant 0 : index
    %c2 = arith.constant 2 : index
    %c0_23 = arith.constant 0 : index
    %c0_24 = arith.constant 0 : index
    %84 = vector.load %arg3[%c0_22, %c2, %c0_23, %c0_24] : memref<4x8x16x128xf32, #tpu.memory_space<vmem>>, vector<4x1x16x128xf32>
    %85 = vector.shape_cast %84 : vector<4x1x16x128xf32> to vector<4x16x128xf32>
    %86 = vector.shape_cast %83 : vector<4x16x128xf32> to vector<4x1x16x128xf32>
    tpu.vector_store %arg3[%c0_22, %c2, %c0_23, %c0_24], %86 {strides = array<i32>} : memref<4x8x16x128xf32, #tpu.memory_space<vmem>>, vector<4x1x16x128xf32>,
    %87 = arith.subf %0, %47 : vector<4x16x128xf32>
    %c0_25 = arith.constant 0 : index
    %c3 = arith.constant 3 : index
    %c0_26 = arith.constant 0 : index
    %c0_27 = arith.constant 0 : index
    %88 = vector.load %arg3[%c0_25, %c3, %c0_26, %c0_27] : memref<4x8x16x128xf32, #tpu.memory_space<vmem>>, vector<4x1x16x128xf32>
    %89 = vector.shape_cast %88 : vector<4x1x16x128xf32> to vector<4x16x128xf32>
    %90 = vector.shape_cast %87 : vector<4x16x128xf32> to vector<4x1x16x128xf32>
    tpu.vector_store %arg3[%c0_25, %c3, %c0_26, %c0_27], %90 {strides = array<i32>} : memref<4x8x16x128xf32, #tpu.memory_space<vmem>>, vector<4x1x16x128xf32>,
    %91 = arith.subf %0, %56 : vector<4x16x128xf32>
    %c0_28 = arith.constant 0 : index
    %c4 = arith.constant 4 : index
    %c0_29 = arith.constant 0 : index
    %c0_30 = arith.constant 0 : index
    %92 = vector.load %arg3[%c0_28, %c4, %c0_29, %c0_30] : memref<4x8x16x128xf32, #tpu.memory_space<vmem>>, vector<4x1x16x128xf32>
    %93 = vector.shape_cast %92 : vector<4x1x16x128xf32> to vector<4x16x128xf32>
    %94 = vector.shape_cast %91 : vector<4x16x128xf32> to vector<4x1x16x128xf32>
    tpu.vector_store %arg3[%c0_28, %c4, %c0_29, %c0_30], %94 {strides = array<i32>} : memref<4x8x16x128xf32, #tpu.memory_space<vmem>>, vector<4x1x16x128xf32>,
    %95 = arith.subf %0, %65 : vector<4x16x128xf32>
    %c0_31 = arith.constant 0 : index
    %c5 = arith.constant 5 : index
    %c0_32 = arith.constant 0 : index
    %c0_33 = arith.constant 0 : index
    %96 = vector.load %arg3[%c0_31, %c5, %c0_32, %c0_33] : memref<4x8x16x128xf32, #tpu.memory_space<vmem>>, vector<4x1x16x128xf32>
    %97 = vector.shape_cast %96 : vector<4x1x16x128xf32> to vector<4x16x128xf32>
    %98 = vector.shape_cast %95 : vector<4x16x128xf32> to vector<4x1x16x128xf32>
    tpu.vector_store %arg3[%c0_31, %c5, %c0_32, %c0_33], %98 {strides = array<i32>} : memref<4x8x16x128xf32, #tpu.memory_space<vmem>>, vector<4x1x16x128xf32>,
    %99 = arith.subf %0, %20 : vector<4x16x128xf32>
    %c0_34 = arith.constant 0 : index
    %c6 = arith.constant 6 : index
    %c0_35 = arith.constant 0 : index
    %c0_36 = arith.constant 0 : index
    %100 = vector.load %arg3[%c0_34, %c6, %c0_35, %c0_36] : memref<4x8x16x128xf32, #tpu.memory_space<vmem>>, vector<4x1x16x128xf32>
    %101 = vector.shape_cast %100 : vector<4x1x16x128xf32> to vector<4x16x128xf32>
    %102 = vector.shape_cast %99 : vector<4x16x128xf32> to vector<4x1x16x128xf32>
    tpu.vector_store %arg3[%c0_34, %c6, %c0_35, %c0_36], %102 {strides = array<i32>} : memref<4x8x16x128xf32, #tpu.memory_space<vmem>>, vector<4x1x16x128xf32>,
    %103 = arith.subf %0, %74 : vector<4x16x128xf32>
    %c0_37 = arith.constant 0 : index
    %c7 = arith.constant 7 : index
    %c0_38 = arith.constant 0 : index
    %c0_39 = arith.constant 0 : index
    %104 = vector.load %arg3[%c0_37, %c7, %c0_38, %c0_39] : memref<4x8x16x128xf32, #tpu.memory_space<vmem>>, vector<4x1x16x128xf32>
    %105 = vector.shape_cast %104 : vector<4x1x16x128xf32> to vector<4x16x128xf32>
    %106 = vector.shape_cast %103 : vector<4x16x128xf32> to vector<4x1x16x128xf32>
    tpu.vector_store %arg3[%c0_37, %c7, %c0_38, %c0_39], %106 {strides = array<i32>} : memref<4x8x16x128xf32, #tpu.memory_space<vmem>>, vector<4x1x16x128xf32>,
    return
  }
  func.func @transform_0(%arg0: i32, %arg1: i32) -> (i32, i32, i32) {
    %c0_i32 = arith.constant 0 : i32
    %c0_i32_0 = arith.constant 0 : i32
    %c0_i32_1 = arith.constant 0 : i32
    return %arg0, %c0_i32, %c0_i32_0 : i32, i32, i32
  }
  func.func @transform_1(%arg0: i32, %arg1: i32) -> (i32, i32, i32, i32) {
    %c0_i32 = arith.constant 0 : i32
    %c0_i32_0 = arith.constant 0 : i32
    %c0_i32_1 = arith.constant 0 : i32
    return %arg0, %arg1, %c0_i32, %c0_i32_0 : i32, i32, i32, i32
  }
}

</mosaic_0001>

<bundles_post_ra>
// kernel: tpu_custom_call.1
= control target key start
LH: loop header
LB: loop body
LE: loop exit
PB: predicated region body
PF: predicated region fallthrough
CT: control target
= control target key end

     0   :  { %6 = vsyncpa [#allocation3], 0  ;;  %s1810_s0 = inlined_call_operand.hbm [shape: f32[8,16,128], index: 0, kind: input, shape index: {}]   ;;  %s1811_s1 = inlined_call_operand.hbm [shape: f32[8,8,16,128], index: 1, kind: output, shape index: {}]  }
   0x1   :  { %8 = vsyncpa [#allocation3 + $0x1], 0 }
   0x2   :  { %9 = vsyncpa [#allocation4], 0 }
   0x3   :  { %11 = vsyncpa [#allocation4 + $0x1], 0  ;;  %s1136_s6 = smov 0   ;;  %s1138_s7 = smov 0  }
   0x4   :  { %s1140_s8 = smov 0   ;;  %s1142_s9 = smov 0  }
   0x5   :  { %s1144_s10 = smov 0   ;;  %s1146_s11 = smov 0  }
   0x6 LB: > { %s843_s12 = sadd.s32 4294967295, %s1116_s11   ;;  %s844_s13 = sadd.s32 4294967294, %s1116_s11   ;;  %s1116_s11 = sphi %s1146_s11, %s17_s11   ;;  %s1112_s10 = sphi %s1144_s10, %s1820_s10   ;;  %s1108_s9 = sphi %s1142_s9, %s1819_s9   ;;  %s1104_s8 = sphi %s1140_s8, %s1818_s8   ;;  %s1100_s7 = sphi %s1138_s7, %s1817_s7   ;;  %s1096_s6 = sphi %s1136_s6, %s1816_s6  }
   0x7   : > { %s29_s14 = sadd.s32 1, %s1112_s10  ;;  %s36_s15 = sadd.s32 1, %s1104_s8 }
   0x8   : > { %p31_p0 = scmp.ge.s32.totalorder %s29_s14, 2  ;;  %p43_p1 = scmp.ne.s32.totalorder %s1104_s8, %s1100_s7 }
   0x9   : > { %p44_p2 = scmp.eq.s32.totalorder %s1116_s11, 0  ;;  %p49_p3 = scmp.ne.s32.totalorder %s1100_s7, %s1096_s6 }
   0xa   : > { %s1822_s14 = smov (%p31_p0, %s29_s14), 0  ;;  %p50_p5 = scmp.eq.s32.totalorder %s843_s12, 0 }
   0xb   : > { %p1177_p4 = por %p44_p2, %p43_p1  ;;  %s33_s17 = ssub.s32 %s1112_s10, %s1822_s14 }
   0xc   : > { %p75_p6 = scmp.eq.s32.totalorder %s843_s12, 1  ;;  %p34_p7 = scmp.eq.s32.totalorder %s33_s17, 0 }
   0xd   : > { %p1183_p8 = por %p50_p5, %p49_p3  ;;  %p81_p10 = scmp.eq.s32.totalorder %s844_s13, 1 }
   0xe   : > { %p1187_p9 = por %p75_p6, %p43_p1  ;;  %p846_p12 = scmp.ge.s32.totalorder %s1116_s11, 2 }
   0xf   : > { %s1192_s20 = scalar_select %p34_p7, %s1104_s8, %s36_s15  }
  0x10   : > { %p1194_p11 = por %p81_p10, %p49_p3  ;;  %p932_p13 = scmp.lt.s32.totalorder %s1116_s11, 2 }
  0x11   : > { %s101_s22 = sand.u32 1, %s1104_s8   ;;  %s917_s24 = sshll.u32 %s1112_s10, 6 }
  0x12   : > { %s847_s23 = sshll.u32 %s101_s22, 6  ;;  %s111_s27 = scalar_lea.hbm %s1810_s0, %s917_s24 }
  0x13   : > { %s105_s28 = scalar_lea.vmem [#allocation2], %s847_s23  ;;  %s112_s30 = sshll.u32 %s111_s27, 4  ;;  %s113_s30 = int_to_ptr.hbm [resolvable:$true] %s112_s30 }
  0x14   : > { %s114_s29 = sshll.u32 %s105_s28, 4  ;;  %p925_p0 = pnand %p932_p13, %p1177_p4  ;;  %s115_s29 = int_to_ptr.vmem [resolvable:$true] %s114_s29 }
  0x15   : > { %p851_p1 = scmp.ge.s32.totalorder %s1116_s11, 1  ;;  %s102_s2 = scalar_lea.sflag [#allocation3], %s101_s22 }
  0x16   : > { %s1118_s3 = smov 128   ;;  %s1119_s4 = smov 8  }
  0x17   : > { %927 = dma.hbm_to_vmem [thread:$0]  (!%p925_p0), %s113_s30, 1024, %s115_s29, %s102_s2, %s1118_s3, %s1118_s3, %s1119_s4  }
  0x18   : > { %p122_p2 = scmp.lt.s32.totalorder %s1116_s11, 3 }
  0x1a   : > { %p123_p3 = pnand %p851_p1, %p122_p2 }
  0x1b   : > { %s1210_s5 = sand.u32 (!%p123_p3), 1, %s1100_s7  }
  0x1c   : > { %126 = sbr.rel (%p123_p3) target bundleno = 426 (0x1aa), region = 24  ;;  %s852_s12 = sshll.u32 (!%p123_p3), %s1210_s5, 6 }
  0x1d   : > { %s129_s13 = scalar_lea.sflag (!%p123_p3), [#allocation3], %s1210_s5  ;;  %s132_s15 = scalar_lea.vmem (!%p123_p3), [#allocation2], %s852_s12 }
  0x21   : > { %1087 = dma.done.wait (%p1183_p8), %s129_s13, 1024  }
  0x22   : > { %1089 = vsyncadd (%p1183_p8), %s129_s13, 4294966272  ;;  %v163_v0 = vlaneseq  ;;  %v1120_v1 = vmov 0   ;;  %v1224_v3 = vld [vmem:[%s132_s15 + $0x20] sm:$0xff]  ;;  %v1226_v4 = vld [vmem:[%s132_s15 + $0x28] sm:$0xff]  ;;  %s853_s16 = sshll.u32 %s1210_s5, 9  ;;  %s1121_s17 = smov 1  }
  0x23   : > { %990 = vset.pattern.permute.xlu2 %v1120_v1  ;;  %992 = vset.pattern.permute.xlu1 %v1120_v1  ;;  %v1229_v5 = vld [vmem:[%s132_s15 + $0x10] sm:$0xff]  ;;  %v170_v6 = vrot.slane %v1224_v3, 7  ;;  %v174_v7 = vrot.slane %v1226_v4, 7  ;;  %v1234_v8 = vld [vmem:[%s132_s15 + $0x18] sm:$0xff]  ;;  %v1237_v10 = vld [vmem:[%s132_s15] sm:$0xff]  ;;  %v193_v15 = vperm.slane %v1224_v3, 0 }
  0x24   : > { %991 = vset.pattern.permute.xlu0 %v1120_v1  ;;  %v1222_v2 = vshrl.u32 %v163_v0, 7  ;;  %v169_v9 = vrot.slane %v1229_v5, 7  ;;  %v1239_v11 = vld [vmem:[%s132_s15 + $0x8] sm:$0xff]  ;;  %v173_v12 = vrot.slane %v1234_v8, 7  ;;  %v168_v13 = vrot.slane %v1237_v10, 7  ;;  %v1246_v16 = vld [vmem:[%s132_s15 + $0x30] sm:$0xff] }
  0x25   : > { %v172_v14 = vrot.slane %v1239_v11, 7  ;;  %v192_v19 = vperm.slane %v1229_v5, 0  ;;  %v191_v20 = vperm.slane %v1237_v10, 0  ;;  %v1256_v21 = vld [vmem:[%s132_s15 + $0x38] sm:$0xff]  ;;  %v171_v29 = vrot.slane %v1246_v16, 7  ;;  %s1274_s18 = scalar_lea.vmem [#allocation5], %s853_s16 }
  0x26   : > { %vm176_vm0 = vcmp.lt.s32.totalorder %v1222_v2, 1  ;;  %vm185_vm1 = vcmp.ge.s32.totalorder %v1222_v2, 1  ;;  %v175_v32 = vrot.slane %v1256_v21, 7  ;;  %v194_v33 = vperm.slane %v1246_v16, 0  ;;  %s1122_s22 = smov 127   ;;  %s919_s23 = sshll.u32 %s1108_s9, 9 }
  0x27   : > { %v1250_v17 = vsel %vm176_vm0, %v170_v6, %v174_v7  ;;  %v183_v18 = vsel %vm176_vm0, %v174_v7, %v170_v6  ;;  %v178_v23 = vsel %vm176_vm0, %v169_v9, %v173_v12  ;;  %v177_v24 = vsel %vm176_vm0, %v168_v13, %v172_v14  ;;  %s755_s26 = scalar_lea.hbm %s1811_s1, %s919_s23  ;;  %s756_s27 = sshll.u32 %s1274_s18, 4  ;;  %s757_s27 = int_to_ptr.vmem [resolvable:$true] %s756_s27 }
  0x28   : > { %248 = vrot.lane.b32.xlu2 %v1250_v17, %s1121_s17  ;;  %v625_v22 = vsub.f32 %v1226_v4, %v1250_v17  ;;  %v199_v25 = vsel %vm185_vm1, %v183_v18, %v193_v15  ;;  %244 = vrot.lane.b32.xlu1 %v178_v23, %s1121_s17  ;;  %v623_v26 = vsub.f32 %v1234_v8, %v178_v23  ;;  %v1123_v43 = vmov 127   ;;  %s758_s28 = sshll.u32 %s755_s26, 4  ;;  %s740_s9 = scalar_lea.sflag [#allocation4], %s1210_s5  ;;  %s759_s28 = int_to_ptr.hbm [resolvable:$true] %s758_s28 }
  0x29   : > { %240 = vrot.lane.b32.xlu0 %v177_v24, %s1121_s17  ;;  %v621_v27 = vsub.f32 %v1239_v11, %v177_v24  ;;  %v624_v28 = vsub.f32 %v1224_v3, %v199_v25  ;;  %v182_v30 = vsel %vm176_vm0, %v173_v12, %v169_v9  ;;  %v181_v31 = vsel %vm176_vm0, %v172_v14, %v168_v13  ;;  %s1048_s29 = sshra.s32 %s759_s28, 4  ;;  %s1054_s4 = scalar_lea.hbm %s1811_s1, 1024  ;;  %s1049_s29 = int_to_ptr.hbm [resolvable:$true] %s1048_s29 }
  0x2a   : > { %859 = vst [vmem:[%s1274_s18 + $0x118] sm:$0xff] %v625_v22  ;;  %v1286_v34 = vsel %vm185_vm1, %v182_v30, %v192_v19  ;;  %v195_v35 = vsel %vm185_vm1, %v181_v31, %v191_v20  ;;  %v1296_v38 = vsel %vm176_vm0, %v171_v29, %v175_v32  ;;  %v184_v39 = vsel %vm176_vm0, %v175_v32, %v171_v29  ;;  %s1050_s30 = scalar_lea.hbm %s1049_s29, 512  ;;  %p1055_p7 = scmp.lt.s32.totalorder %s1049_s29, %s1811_s1 }
  0x2b   : > { %857 = vst [vmem:[%s1274_s18 + $0x98] sm:$0xff] %v623_v26  ;;  %v622_v36 = vsub.f32 %v1229_v5, %v1286_v34  ;;  %v620_v37 = vsub.f32 %v1237_v10, %v195_v35  ;;  %v627_v40 = vsub.f32 %v1256_v21, %v1296_v38  ;;  %v201_v41 = vsel %vm185_vm1, %v184_v39, %v194_v33  ;;  %p1051_p4 = scmp.ne.s32.totalorder %s1049_s29, %s1050_s30  ;;  %p1056_p8 = scmp.lt.s32.totalorder %s1054_s4, %s1050_s30 }
  0x2c   : > { %855 = vst [vmem:[%s1274_s18 + $0x18] sm:$0xff] %v621_v27  ;;  %v626_v42 = vsub.f32 %v1246_v16, %v201_v41  ;;  %v1340_v44 = vadd.s32 8, %v1222_v2  ;;  %v203_v45 = vrot.slane %v1237_v10, 1  ;;  %v207_v46 = vrot.slane %v1239_v11, 1 }
  0x2d   : > { %858 = vst [vmem:[%s1274_s18 + $0x110] sm:$0xff] %v624_v28  ;;  %vm211_vm2 = vcmp.lt.s32.totalorder %v1222_v2, 7  ;;  %v226_v47 = vperm.slane %v1239_v11, 7  ;;  %v205_v52 = vrot.slane %v1224_v3, 1  ;;  %v209_v53 = vrot.slane %v1226_v4, 1  ;;  %p1052_p5 = pnand %p1051_p4, %p1187_p9  ;;  %p1057_p10 = por %p1056_p8, %p1055_p7 }
  0x2e   : > { %856 = vst [vmem:[%s1274_s18 + $0x90] sm:$0xff] %v622_v36  ;;  %v216_v48 = vsel %vm211_vm2, %v207_v46, %v203_v45  ;;  %vm221_vm3 = vcmp.lt.s32.totalorder %v1340_v44, 15  ;;  %v206_v57 = vrot.slane %v1246_v16, 1  ;;  %v210_v58 = vrot.slane %v1256_v21, 1 }
  0x2f   : > { %854 = vst [vmem:[%s1274_s18 + $0x10] sm:$0xff] %v620_v37  ;;  %v1357_v49 = vsel %vm221_vm3, %v216_v48, %v226_v47  ;;  %v1377_v54 = vsel %vm211_vm2, %v205_v52, %v209_v53  ;;  %v229_v59 = vperm.slane %v1256_v21, 7  ;;  %v1411_v6 = vand.u32 127, %v163_v0  ;;  %p1053_p6 = pneg %p1052_p5 }
  0x30   : > { %246 = vrot.lane.b32.xlu2 %v199_v25, %s1121_s17  ;;  %861 = vst [vmem:[%s1274_s18 + $0x198] sm:$0xff] %v627_v40  ;;  %242 = vrot.lane.b32.xlu1 %v1286_v34, %s1121_s17  ;;  %v706_v50 = vsub.f32 %v1239_v11, %v1357_v49  ;;  %v709_v55 = vsub.f32 %v1224_v3, %v1377_v54  ;;  %v204_v7 = vrot.slane %v1229_v5, 1  ;;  %v208_v9 = vrot.slane %v1234_v8, 1 }
  0x31   : > { %238 = vrot.lane.b32.xlu0 %v195_v35, %s1121_s17  ;;  %860 = vst [vmem:[%s1274_s18 + $0x190] sm:$0xff] %v626_v42  ;;  %v219_v60 = vsel %vm211_vm2, %v210_v58, %v206_v57  ;;  %vm254_vm4 = vcmp.ge.s32.totalorder %v1411_v6, 1  ;;  %v1477_v39 = vsel %vm211_vm2, %v203_v45, %v207_v46  ;;  %vm321_vm5 = vcmp.lt.s32.totalorder %v1411_v6, 127  ;;  %p1058_p13 = pnand %p1057_p10, %p1053_p6 }
  0x32   : > { %895 = vst [vmem:[%s1274_s18 + $0x68] sm:$0xff] %v706_v50  ;;  %v1401_v61 = vsel %vm221_vm3, %v219_v60, %v229_v59  ;;  %v1420_v12 = vsel %vm211_vm2, %v204_v7, %v208_v9  ;;  %v705_v40 = vsub.f32 %v1237_v10, %v1477_v39 }
  0x33   : > { %898 = vst [vmem:[%s1274_s18 + $0x160] sm:$0xff] %v709_v55  ;;  %v712_v62 = vsub.f32 %v1256_v21, %v1401_v61  ;;  %v707_v0 = vsub.f32 %v1229_v5, %v1420_v12  ;;  %v217_v55 = vsel %vm211_vm2, %v208_v9, %v204_v7 }
  0x34   : > { %894 = vst [vmem:[%s1274_s18 + $0x60] sm:$0xff] %v705_v40 }
  0x35   : > { %901 = vst [vmem:[%s1274_s18 + $0x1e8] sm:$0xff] %v712_v62 }
  0x36   : > { %896 = vst [vmem:[%s1274_s18 + $0xe0] sm:$0xff] %v707_v0 }
  0x38   : > { %259 = vperm.xlu2 %990, %v195_v35   ;;  %252 = vrot.lane.b32.xlu1 %v1296_v38, %s1121_s17 }
  0x39   : > { %250 = vrot.lane.b32.xlu0 %v201_v41, %s1121_s17 }
  0x40   : > { %274 = vperm.xlu2 %990, %v178_v23   ;;  %269 = vperm.xlu1 %992, %v1286_v34  }
  0x41   : > { %264 = vperm.xlu0 %991, %v177_v24  }
  0x48   : > { %284 = vperm.xlu2 %990, %v1250_v17   ;;  %279 = vperm.xlu1 %992, %v199_v25  }
  0x49   : > { %289 = vperm.xlu0 %991, %v201_v41  }
  0x50   : > { %305 = vrot.lane.b32.xlu2 %v195_v35, %s1122_s22  ;;  %294 = vperm.xlu1 %992, %v1296_v38  }
  0x51   : > { %307 = vrot.lane.b32.xlu0 %v177_v24, %s1122_s22  ;;  %994 = vset.pattern.permute.xlu2 %v1123_v43 }
  0x58   : > { %311 = vrot.lane.b32.xlu2 %v178_v23, %s1122_s22  ;;  %309 = vrot.lane.b32.xlu1 %v1286_v34, %s1122_s22 }
  0x59   : > { %313 = vrot.lane.b32.xlu0 %v199_v25, %s1122_s22  ;;  %993 = vset.pattern.permute.xlu1 %v1123_v43 }
  0x60   : > { %317 = vrot.lane.b32.xlu2 %v201_v41, %s1122_s22  ;;  %315 = vrot.lane.b32.xlu1 %v1250_v17, %s1122_s22 }
  0x61   : > { %319 = vrot.lane.b32.xlu0 %v1296_v38, %s1122_s22 }
  0x68   : > { %329 = vperm.xlu2 %994, %v177_v24   ;;  %325 = vperm.xlu1 %993, %v195_v35  }
  0x69   : > { %368 = vrot.lane.b32.xlu0 %v1229_v5, %s1121_s17 }
  0x70   : > { %341 = vperm.xlu2 %994, %v199_v25   ;;  %337 = vperm.xlu1 %993, %v178_v23  }
  0x71   : > { %374 = vrot.lane.b32.xlu0 %v1226_v4, %s1121_s17 }
  0x78   : > { %349 = vperm.xlu2 %994, %v201_v41   ;;  %345 = vperm.xlu1 %993, %v1250_v17  }
  0x79   : > { %382 = vperm.xlu0 %991, %v1237_v10  }
  0x80   : > { %366 = vrot.lane.b32.xlu2 %v1239_v11, %s1121_s17  ;;  %364 = vrot.lane.b32.xlu1 %v1237_v10, %s1121_s17 }
  0x81   : > { %407 = vperm.xlu0 %991, %v1226_v4   ;;  %995 = vset.pattern.permute.xlu1 %v1120_v1 }
  0x82   : > { %v249_v51 = vpop.permute.xlu2 %248  ;;  %996 = vset.pattern.permute.xlu2 %v1120_v1 }
  0x88   : > { %372 = vrot.lane.b32.xlu2 %v1224_v3, %s1121_s17  ;;  %370 = vrot.lane.b32.xlu1 %v1234_v8, %s1121_s17 }
  0x89   : > { %428 = vrot.lane.b32.xlu0 %v1237_v10, %s1122_s22 }
  0x8a   : > { %v1385_v56 = vpop.permute.xlu2 %246 }
  0x90   : > { %378 = vrot.lane.b32.xlu2 %v1256_v21, %s1121_s17  ;;  %376 = vrot.lane.b32.xlu1 %v1246_v16, %s1121_s17 }
  0x91   : > { %434 = vrot.lane.b32.xlu0 %v1234_v8, %s1122_s22 }
  0x92   : > { %v260_v63 = vpop.permute.xlu2 %259 }
  0x98   : > { %392 = vperm.xlu2 %996, %v1229_v5   ;;  %387 = vperm.xlu1 %995, %v1239_v11  }
  0x99   : > { %440 = vrot.lane.b32.xlu0 %v1246_v16, %s1122_s22 }
  0x9a   : > { %v275_v13 = vpop.permute.xlu2 %274  ;;  %v245_v14 = vpop.permute.xlu1 %244 }
  0x9b   : > { %v241_v15 = vpop.permute.xlu0 %240  ;;  %v300_v17 = vsel %vm254_vm4, %v245_v14, %v275_v13  ;;  %v228_v14 = vperm.slane %v1226_v4, 7 }
  0x9c   : > { %v607_v18 = vsub.f32 %v1234_v8, %v300_v17 }
  0x9e   : > { %615 = vst [vmem:[%s1274_s18 + $0x88] sm:$0xff] %v607_v18  ;;  %v1537_v18 = vsel %vm211_vm2, %v206_v57, %v210_v58 }
  0x9f   : > { %v711_v44 = vsub.f32 %v1246_v16, %v1537_v18 }
  0xa0   : > { %402 = vperm.xlu2 %996, %v1224_v3   ;;  %397 = vperm.xlu1 %995, %v1234_v8  }
  0xa1   : > { %486 = vrot.lane.b32.xlu0 %v1357_v49, %s1121_s17  ;;  %900 = vst [vmem:[%s1274_s18 + $0x1e0] sm:$0xff] %v711_v44 }
  0xa2   : > { %v285_v19 = vpop.permute.xlu2 %284  ;;  %v243_v20 = vpop.permute.xlu1 %242 }
  0xa3   : > { %v302_v22 = vsel %vm254_vm4, %v249_v51, %v285_v19  ;;  %v239_v23 = vpop.permute.xlu0 %238  ;;  %v227_v51 = vperm.slane %v1234_v8, 7 }
  0xa4   : > { %v609_v24 = vsub.f32 %v1226_v4, %v302_v22  ;;  %v297_v25 = vsel %vm254_vm4, %v239_v23, %v260_v63 }
  0xa5   : > { %v604_v26 = vsub.f32 %v1237_v10, %v297_v25 }
  0xa6   : > { %617 = vst [vmem:[%s1274_s18 + $0x108] sm:$0xff] %v609_v24 }
  0xa7   : > { %612 = vst [vmem:[%s1274_s18] sm:$0xff] %v604_v26 }
  0xa8   : > { %417 = vperm.xlu2 %996, %v1256_v21   ;;  %412 = vperm.xlu1 %995, %v1246_v16  }
  0xa9   : > { %492 = vrot.lane.b32.xlu0 %v1377_v54, %s1121_s17 }
  0xaa   : > { %v1449_v27 = vpop.permute.xlu2 %305  ;;  %v253_v28 = vpop.permute.xlu1 %252 }
  0xab   : > { %v251_v29 = vpop.permute.xlu0 %250 }
  0xb0   : > { %432 = vrot.lane.b32.xlu2 %v1229_v5, %s1122_s22  ;;  %430 = vrot.lane.b32.xlu1 %v1239_v11, %s1122_s22 }
  0xb1   : > { %498 = vrot.lane.b32.xlu0 %v1401_v61, %s1121_s17  ;;  %997 = vset.pattern.permute.xlu2 %v1123_v43 }
  0xb2   : > { %v1457_v30 = vpop.permute.xlu2 %311  ;;  %998 = vset.pattern.permute.xlu1 %v1123_v43  ;;  %v270_v31 = vpop.permute.xlu1 %269 }
  0xb3   : > { %v265_v32 = vpop.permute.xlu0 %264  ;;  %v299_v33 = vsel %vm254_vm4, %v243_v20, %v270_v31 }
  0xb4   : > { %v298_v35 = vsel %vm254_vm4, %v241_v15, %v265_v32  ;;  %v606_v36 = vsub.f32 %v1229_v5, %v299_v33  ;;  %v218_v15 = vsel %vm211_vm2, %v209_v53, %v205_v52 }
  0xb5   : > { %v605_v37 = vsub.f32 %v1239_v11, %v298_v35  ;;  %v1529_v17 = vsel %vm221_vm3, %v218_v15, %v228_v14 }
  0xb6   : > { %614 = vst [vmem:[%s1274_s18 + $0x80] sm:$0xff] %v606_v36  ;;  %v710_v52 = vsub.f32 %v1226_v4, %v1529_v17 }
  0xb7   : > { %613 = vst [vmem:[%s1274_s18 + $0x8] sm:$0xff] %v605_v37 }
  0xb8   : > { %438 = vrot.lane.b32.xlu2 %v1226_v4, %s1122_s22  ;;  %436 = vrot.lane.b32.xlu1 %v1224_v3, %s1122_s22  ;;  %899 = vst [vmem:[%s1274_s18 + $0x168] sm:$0xff] %v710_v52 }
  0xb9   : > { %512 = vperm.xlu0 %991, %v1420_v12  }
  0xba   : > { %v318_v41 = vpop.permute.xlu2 %317  ;;  %v280_v42 = vpop.permute.xlu1 %279 }
  0xbb   : > { %v290_v47 = vpop.permute.xlu0 %289  ;;  %v301_v48 = vsel %vm254_vm4, %v1385_v56, %v280_v42  ;;  %v1502_v56 = vsel %vm221_vm3, %v217_v55, %v227_v51 }
  0xbc   : > { %v303_v45 = vsel %vm254_vm4, %v251_v29, %v290_v47  ;;  %v608_v46 = vsub.f32 %v1224_v3, %v301_v48  ;;  %v708_v59 = vsub.f32 %v1234_v8, %v1502_v56 }
  0xbd   : > { %v610_v50 = vsub.f32 %v1246_v16, %v303_v45 }
  0xbe   : > { %616 = vst [vmem:[%s1274_s18 + $0x100] sm:$0xff] %v608_v46 }
  0xbf   : > { %618 = vst [vmem:[%s1274_s18 + $0x180] sm:$0xff] %v610_v50 }
  0xc0   : > { %445 = vperm.xlu2 %997, %v1237_v10   ;;  %442 = vrot.lane.b32.xlu1 %v1256_v21, %s1122_s22  ;;  %897 = vst [vmem:[%s1274_s18 + $0xe8] sm:$0xff] %v708_v59 }
  0xc1   : > { %537 = vperm.xlu0 %991, %v1401_v61  }
  0xc2   : > { %v330_v60 = vpop.permute.xlu2 %329  ;;  %v295_v62 = vpop.permute.xlu1 %294 }
  0xc3   : > { %v308_v63 = vpop.permute.xlu0 %307  ;;  %v304_v7 = vsel %vm254_vm4, %v253_v28, %v295_v62 }
  0xc4   : > { %v357_v9 = vsel %vm321_vm5, %v308_v63, %v330_v60  ;;  %v611_v0 = vsub.f32 %v1256_v21, %v304_v7 }
  0xc5   : > { %v638_v13 = vsub.f32 %v1239_v11, %v357_v9 }
  0xc6   : > { %619 = vst [vmem:[%s1274_s18 + $0x188] sm:$0xff] %v611_v0 }
  0xc7   : > { %863 = vst [vmem:[%s1274_s18 + $0x28] sm:$0xff] %v638_v13 }
  0xc8   : > { %457 = vperm.xlu2 %997, %v1234_v8   ;;  %453 = vperm.xlu1 %998, %v1229_v5  }
  0xc9   : > { %1001 = vset.pattern.permute.xlu0 %v1123_v43 }
  0xca   : > { %333 = vperm.xlu0 %1001, %v1286_v34   ;;  %v342_v53 = vpop.permute.xlu2 %341  ;;  %v1546_v19 = vpop.permute.xlu1 %309 }
  0xcb   : > { %v314_v20 = vpop.permute.xlu0 %313 }
  0xcc   : > { %v360_v2 = vsel %vm321_vm5, %v314_v20, %v342_v53 }
  0xcd   : > { %v641_v57 = vsub.f32 %v1224_v3, %v360_v2 }
  0xcf   : > { %866 = vst [vmem:[%s1274_s18 + $0x120] sm:$0xff] %v641_v57 }
  0xd0   : > { %465 = vperm.xlu2 %997, %v1226_v4   ;;  %461 = vperm.xlu1 %998, %v1224_v3  }
  0xd2   : > { %353 = vperm.xlu0 %1001, %v1296_v38   ;;  %v350_v34 = vpop.permute.xlu2 %349  ;;  %v316_v58 = vpop.permute.xlu1 %315 }
  0xd3   : > { %v362_v22 = vsel %vm321_vm5, %v318_v41, %v350_v34  ;;  %v1559_v23 = vpop.permute.xlu0 %319 }
  0xd4   : > { %v643_v24 = vsub.f32 %v1246_v16, %v362_v22 }
  0xd6   : > { %868 = vst [vmem:[%s1274_s18 + $0x1a0] sm:$0xff] %v643_v24 }
  0xd8   : > { %484 = vrot.lane.b32.xlu2 %v1477_v39, %s1121_s17  ;;  %473 = vperm.xlu1 %998, %v1256_v21  }
  0xd9   : > { %1000 = vset.pattern.permute.xlu2 %v1120_v1 }
  0xda   : > { %449 = vperm.xlu0 %1001, %v1239_v11   ;;  %v1568_v38 = vpop.permute.xlu2 %366  ;;  %v326_v25 = vpop.permute.xlu1 %325 }
  0xdb   : > { %v369_v26 = vpop.permute.xlu0 %368  ;;  %v356_v28 = vsel %vm321_vm5, %v1449_v27, %v326_v25 }
  0xdc   : > { %v637_v29 = vsub.f32 %v1237_v10, %v356_v28 }
  0xde   : > { %862 = vst [vmem:[%s1274_s18 + $0x20] sm:$0xff] %v637_v29 }
  0xe0   : > { %490 = vrot.lane.b32.xlu2 %v1502_v56, %s1121_s17  ;;  %488 = vrot.lane.b32.xlu1 %v1420_v12, %s1121_s17 }
  0xe1   : > { %999 = vset.pattern.permute.xlu1 %v1120_v1 }
  0xe2   : > { %469 = vperm.xlu0 %1001, %v1246_v16   ;;  %v373_v31 = vpop.permute.xlu2 %372  ;;  %v338_v32 = vpop.permute.xlu1 %337 }
  0xe3   : > { %v375_v33 = vpop.permute.xlu0 %374  ;;  %v359_v27 = vsel %vm321_vm5, %v1457_v30, %v338_v32 }
  0xe4   : > { %v640_v35 = vsub.f32 %v1234_v8, %v359_v27 }
  0xe6   : > { %865 = vst [vmem:[%s1274_s18 + $0xa8] sm:$0xff] %v640_v35 }
  0xe8   : > { %496 = vrot.lane.b32.xlu2 %v1537_v18, %s1121_s17  ;;  %494 = vrot.lane.b32.xlu1 %v1529_v17, %s1121_s17 }
  0xea   : > { %552 = vrot.lane.b32.xlu0 %v1420_v12, %s1122_s22  ;;  %v379_v36 = vpop.permute.xlu2 %378  ;;  %v346_v1 = vpop.permute.xlu1 %345 }
  0xeb   : > { %v383_v37 = vpop.permute.xlu0 %382  ;;  %v361_v40 = vsel %vm321_vm5, %v316_v58, %v346_v1 }
  0xec   : > { %v642_v30 = vsub.f32 %v1226_v4, %v361_v40 }
  0xee   : > { %867 = vst [vmem:[%s1274_s18 + $0x128] sm:$0xff] %v642_v30 }
  0xf0   : > { %507 = vperm.xlu2 %1000, %v1357_v49   ;;  %502 = vperm.xlu1 %999, %v1477_v39  }
  0xf2   : > { %558 = vrot.lane.b32.xlu0 %v1529_v17, %s1122_s22  ;;  %v393_v41 = vpop.permute.xlu2 %392  ;;  %v365_v42 = vpop.permute.xlu1 %364 }
  0xf3   : > { %v422_v47 = vsel %vm254_vm4, %v369_v26, %v393_v41  ;;  %v408_v48 = vpop.permute.xlu0 %407  ;;  %v420_v45 = vsel %vm254_vm4, %v365_v42, %v383_v37 }
  0xf4   : > { %v656_v46 = vsub.f32 %v1229_v5, %v422_v47  ;;  %v425_v50 = vsel %vm254_vm4, %v375_v33, %v408_v48  ;;  %v654_v51 = vsub.f32 %v1237_v10, %v420_v45 }
  0xf5   : > { %v659_v55 = vsub.f32 %v1226_v4, %v425_v50 }
  0xf6   : > { %872 = vst [vmem:[%s1274_s18 + $0xb0] sm:$0xff] %v656_v46 }
  0xf7   : > { %870 = vst [vmem:[%s1274_s18 + $0x30] sm:$0xff] %v654_v51 }
  0xf8   : > { %875 = vst [vmem:[%s1274_s18 + $0x138] sm:$0xff] %v659_v55  ;;  %522 = vperm.xlu2 %1000, %v1377_v54   ;;  %517 = vperm.xlu1 %999, %v1502_v56  }
  0xfa   : > { %565 = vperm.xlu0 %1001, %v1477_v39   ;;  %v403_v59 = vpop.permute.xlu2 %402  ;;  %v371_v60 = vpop.permute.xlu1 %370 }
  0xfb   : > { %v424_v62 = vsel %vm254_vm4, %v373_v31, %v403_v59  ;;  %v429_v63 = vpop.permute.xlu0 %428 }
  0xfc   : > { %v658_v7 = vsub.f32 %v1224_v3, %v424_v62 }
  0xfe   : > { %874 = vst [vmem:[%s1274_s18 + $0x130] sm:$0xff] %v658_v7 }
 0x100   : > { %532 = vperm.xlu2 %1000, %v1537_v18   ;;  %527 = vperm.xlu1 %999, %v1529_v17  }
 0x102   : > { %585 = vperm.xlu0 %1001, %v1529_v17   ;;  %v418_v9 = vpop.permute.xlu2 %417  ;;  %v377_v0 = vpop.permute.xlu1 %376 }
 0x103   : > { %v427_v13 = vsel %vm254_vm4, %v379_v36, %v418_v9  ;;  %v435_v14 = vpop.permute.xlu0 %434 }
 0x104   : > { %v661_v15 = vsub.f32 %v1256_v21, %v427_v13 }
 0x106   : > { %877 = vst [vmem:[%s1274_s18 + $0x1b8] sm:$0xff] %v661_v15 }
 0x108   : > { %550 = vrot.lane.b32.xlu2 %v1357_v49, %s1122_s22  ;;  %548 = vrot.lane.b32.xlu1 %v1477_v39, %s1122_s22 }
 0x109   : > { %1003 = vset.pattern.permute.xlu2 %v1123_v43  ;;  %1002 = vset.pattern.permute.xlu1 %v1123_v43 }
 0x10a   : > { %v433_v17 = vpop.permute.xlu2 %432  ;;  %v388_v52 = vpop.permute.xlu1 %387 }
 0x10b   : > { %v1632_v44 = vpop.permute.xlu0 %440  ;;  %v421_v53 = vsel %vm254_vm4, %v1568_v38, %v388_v52 }
 0x10c   : > { %v655_v20 = vsub.f32 %v1239_v11, %v421_v53 }
 0x10e   : > { %871 = vst [vmem:[%s1274_s18 + $0x38] sm:$0xff] %v655_v20 }
 0x110   : > { %556 = vrot.lane.b32.xlu2 %v1377_v54, %s1122_s22  ;;  %554 = vrot.lane.b32.xlu1 %v1502_v56, %s1122_s22 }
 0x112   : > { %v439_v39 = vpop.permute.xlu2 %438  ;;  %v398_v43 = vpop.permute.xlu1 %397 }
 0x113   : > { %v487_v2 = vpop.permute.xlu0 %486  ;;  %v423_v57 = vsel %vm254_vm4, %v371_v60, %v398_v43 }
 0x114   : > { %v657_v34 = vsub.f32 %v1234_v8, %v423_v57 }
 0x116   : > { %873 = vst [vmem:[%s1274_s18 + $0xb8] sm:$0xff] %v657_v34 }
 0x118   : > { %562 = vrot.lane.b32.xlu2 %v1401_v61, %s1122_s22  ;;  %560 = vrot.lane.b32.xlu1 %v1537_v18, %s1122_s22 }
 0x11a   : > { %v446_v58 = vpop.permute.xlu2 %445  ;;  %v413_v22 = vpop.permute.xlu1 %412 }
 0x11b   : > { %v476_v24 = vsel %vm321_vm5, %v429_v63, %v446_v58  ;;  %v1653_v38 = vpop.permute.xlu0 %492  ;;  %v426_v25 = vsel %vm254_vm4, %v377_v0, %v413_v22 }
 0x11c   : > { %v671_v26 = vsub.f32 %v1237_v10, %v476_v24  ;;  %v660_v28 = vsub.f32 %v1246_v16, %v426_v25 }
 0x11e   : > { %878 = vst [vmem:[%s1274_s18 + $0x40] sm:$0xff] %v671_v26 }
 0x11f   : > { %876 = vst [vmem:[%s1274_s18 + $0x1b0] sm:$0xff] %v660_v28 }
 0x120   : > { %573 = vperm.xlu2 %1003, %v1420_v12   ;;  %569 = vperm.xlu1 %1002, %v1357_v49  }
 0x122   : > { %v458_v29 = vpop.permute.xlu2 %457  ;;  %v431_v31 = vpop.permute.xlu1 %430 }
 0x123   : > { %v479_v32 = vsel %vm321_vm5, %v435_v14, %v458_v29  ;;  %v499_v33 = vpop.permute.xlu0 %498 }
 0x124   : > { %v674_v27 = vsub.f32 %v1234_v8, %v479_v32 }
 0x126   : > { %881 = vst [vmem:[%s1274_s18 + $0xc8] sm:$0xff] %v674_v27 }
 0x128   : > { %581 = vperm.xlu2 %1003, %v1377_v54   ;;  %577 = vperm.xlu1 %1002, %v1502_v56  }
 0x12a   : > { %v466_v35 = vpop.permute.xlu2 %465  ;;  %v437_v36 = vpop.permute.xlu1 %436 }
 0x12b   : > { %v481_v12 = vsel %vm321_vm5, %v439_v39, %v466_v35  ;;  %v513_v49 = vpop.permute.xlu0 %512 }
 0x12c   : > { %v676_v1 = vsub.f32 %v1226_v4, %v481_v12 }
 0x12e   : > { %883 = vst [vmem:[%s1274_s18 + $0x148] sm:$0xff] %v676_v1 }
 0x130   : > { %593 = vperm.xlu2 %1003, %v1401_v61   ;;  %589 = vperm.xlu1 %1002, %v1537_v18  }
 0x132   : > { %v485_v37 = vpop.permute.xlu2 %484  ;;  %v443_v40 = vpop.permute.xlu1 %442 }
 0x133   : > { %v538_v54 = vpop.permute.xlu0 %537 }
 0x134   : > { %v547_v56 = vsel %vm254_vm4, %v499_v33, %v538_v54 }
 0x135   : > { %v695_v30 = vsub.f32 %v1256_v21, %v547_v56 }
 0x137   : > { %893 = vst [vmem:[%s1274_s18 + $0x1d8] sm:$0xff] %v695_v30 }
 0x13a   : > { %v491_v41 = vpop.permute.xlu2 %490  ;;  %v454_v42 = vpop.permute.xlu1 %453 }
 0x13b   : > { %v478_v47 = vsel %vm321_vm5, %v433_v17, %v454_v42 }
 0x13c   : > { %v334_v61 = vpop.permute.xlu0 %333  ;;  %v673_v48 = vsub.f32 %v1229_v5, %v478_v47 }
 0x13d   : > { %v358_v18 = vsel %vm321_vm5, %v1546_v19, %v334_v61 }
 0x13e   : > { %v639_v45 = vsub.f32 %v1229_v5, %v358_v18  ;;  %880 = vst [vmem:[%s1274_s18 + $0xc0] sm:$0xff] %v673_v48 }
 0x140   : > { %864 = vst [vmem:[%s1274_s18 + $0xa0] sm:$0xff] %v639_v45 }
 0x142   : > { %v497_v46 = vpop.permute.xlu2 %496  ;;  %v462_v50 = vpop.permute.xlu1 %461 }
 0x143   : > { %v480_v51 = vsel %vm321_vm5, %v437_v36, %v462_v50 }
 0x144   : > { %v354_v55 = vpop.permute.xlu0 %353  ;;  %v675_v59 = vsub.f32 %v1224_v3, %v480_v51 }
 0x145   : > { %v363_v60 = vsel %vm321_vm5, %v1559_v23, %v354_v55 }
 0x146   : > { %v644_v19 = vsub.f32 %v1256_v21, %v363_v60  ;;  %882 = vst [vmem:[%s1274_s18 + $0x140] sm:$0xff] %v675_v59 }
 0x148   : > { %869 = vst [vmem:[%s1274_s18 + $0x1a8] sm:$0xff] %v644_v19 }
 0x14a   : > { %v508_v62 = vpop.permute.xlu2 %507  ;;  %v474_v63 = vpop.permute.xlu1 %473 }
 0x14b   : > { %v541_v7 = vsel %vm254_vm4, %v487_v2, %v508_v62  ;;  %v483_v9 = vsel %vm321_vm5, %v443_v40, %v474_v63 }
 0x14c   : > { %v689_v0 = vsub.f32 %v1239_v11, %v541_v7  ;;  %v450_v13 = vpop.permute.xlu0 %449  ;;  %v678_v14 = vsub.f32 %v1256_v21, %v483_v9 }
 0x14d   : > { %v477_v23 = vsel %vm321_vm5, %v431_v31, %v450_v13 }
 0x14e   : > { %887 = vst [vmem:[%s1274_s18 + $0x58] sm:$0xff] %v689_v0  ;;  %v672_v15 = vsub.f32 %v1239_v11, %v477_v23 }
 0x14f   : > { %885 = vst [vmem:[%s1274_s18 + $0x1c8] sm:$0xff] %v678_v14 }
 0x150   : > { %879 = vst [vmem:[%s1274_s18 + $0x48] sm:$0xff] %v672_v15 }
 0x152   : > { %v523_v17 = vpop.permute.xlu2 %522  ;;  %v489_v52 = vpop.permute.xlu1 %488 }
 0x153   : > { %v544_v53 = vsel %vm254_vm4, %v1653_v38, %v523_v17  ;;  %v542_v20 = vsel %vm254_vm4, %v489_v52, %v513_v49 }
 0x154   : > { %v692_v39 = vsub.f32 %v1224_v3, %v544_v53  ;;  %v470_v43 = vpop.permute.xlu0 %469  ;;  %v690_v2 = vsub.f32 %v1229_v5, %v542_v20 }
 0x155   : > { %v482_v57 = vsel %vm321_vm5, %v1632_v44, %v470_v43 }
 0x156   : > { %890 = vst [vmem:[%s1274_s18 + $0x150] sm:$0xff] %v692_v39  ;;  %v677_v34 = vsub.f32 %v1246_v16, %v482_v57 }
 0x157   : > { %888 = vst [vmem:[%s1274_s18 + $0xd0] sm:$0xff] %v690_v2 }
 0x158   : > { %884 = vst [vmem:[%s1274_s18 + $0x1c0] sm:$0xff] %v677_v34 }
 0x15a   : > { %v533_v58 = vpop.permute.xlu2 %532  ;;  %v495_v22 = vpop.permute.xlu1 %494 }
 0x15b   : > { %v546_v24 = vsel %vm254_vm4, %v497_v46, %v533_v58 }
 0x15c   : > { %v694_v38 = vsub.f32 %v1246_v16, %v546_v24  ;;  %v553_v25 = vpop.permute.xlu0 %552 }
 0x15e   : > { %892 = vst [vmem:[%s1274_s18 + $0x1d0] sm:$0xff] %v694_v38 }
 0x162   : > { %v551_v26 = vpop.permute.xlu2 %550  ;;  %v503_v28 = vpop.permute.xlu1 %502 }
 0x163   : > { %v540_v44 = vsel %vm254_vm4, %v485_v37, %v503_v28 }
 0x164   : > { %v559_v29 = vpop.permute.xlu0 %558  ;;  %v688_v31 = vsub.f32 %v1237_v10, %v540_v44 }
 0x166   : > { %886 = vst [vmem:[%s1274_s18 + $0x50] sm:$0xff] %v688_v31 }
 0x16a   : > { %v557_v32 = vpop.permute.xlu2 %556  ;;  %v518_v33 = vpop.permute.xlu1 %517 }
 0x16b   : > { %v543_v27 = vsel %vm254_vm4, %v491_v41, %v518_v33 }
 0x16c   : > { %v566_v35 = vpop.permute.xlu0 %565  ;;  %v691_v36 = vsub.f32 %v1234_v8, %v543_v27 }
 0x16e   : > { %889 = vst [vmem:[%s1274_s18 + $0xd8] sm:$0xff] %v691_v36 }
 0x172   : > { %v563_v12 = vpop.permute.xlu2 %562  ;;  %v528_v49 = vpop.permute.xlu1 %527 }
 0x173   : > { %v545_v1 = vsel %vm254_vm4, %v495_v22, %v528_v49 }
 0x174   : > { %v586_v37 = vpop.permute.xlu0 %585  ;;  %v693_v40 = vsub.f32 %v1226_v4, %v545_v1 }
 0x175   : > { %v601_v54 = vsel %vm321_vm5, %v559_v29, %v586_v37 }
 0x176   : > { %v727_v56 = vsub.f32 %v1226_v4, %v601_v54  ;;  %891 = vst [vmem:[%s1274_s18 + $0x158] sm:$0xff] %v693_v40 }
 0x178   : > { %907 = vst [vmem:[%s1274_s18 + $0x178] sm:$0xff] %v727_v56 }
 0x17a   : > { %v574_v30 = vpop.permute.xlu2 %573  ;;  %v549_v41 = vpop.permute.xlu1 %548 }
 0x17b   : > { %v598_v42 = vsel %vm321_vm5, %v553_v25, %v574_v30  ;;  %v596_v47 = vsel %vm321_vm5, %v549_v41, %v566_v35 }
 0x17c   : > { %v724_v61 = vsub.f32 %v1229_v5, %v598_v42  ;;  %v722_v48 = vsub.f32 %v1237_v10, %v596_v47 }
 0x17e   : > { %904 = vst [vmem:[%s1274_s18 + $0xf0] sm:$0xff] %v724_v61 }
 0x17f   : > { %902 = vst [vmem:[%s1274_s18 + $0x70] sm:$0xff] %v722_v48 }
 0x182   : > { %v582_v4 = vpop.permute.xlu2 %581  ;;  %v555_v18 = vpop.permute.xlu1 %554 }
 0x183   : > { %v600_v45 = vsel %vm321_vm5, %v557_v32, %v582_v4 }
 0x184   : > { %v726_v46 = vsub.f32 %v1224_v3, %v600_v45 }
 0x186   : > { %906 = vst [vmem:[%s1274_s18 + $0x170] sm:$0xff] %v726_v46 }
 0x18a   : > { %v594_v50 = vpop.permute.xlu2 %593  ;;  %v561_v51 = vpop.permute.xlu1 %560 }
 0x18b   : > { %v603_v5 = vsel %vm321_vm5, %v563_v12, %v594_v50 }
 0x18c   : > { %v729_v10 = vsub.f32 %v1256_v21, %v603_v5 }
 0x18e   : > { %909 = vst [vmem:[%s1274_s18 + $0x1f8] sm:$0xff] %v729_v10 }
 0x192   : > { %v570_v55 = vpop.permute.xlu1 %569 }
 0x193   : > { %v597_v59 = vsel %vm321_vm5, %v551_v26, %v570_v55 }
 0x194   : > { %v723_v60 = vsub.f32 %v1239_v11, %v597_v59 }
 0x196   : > { %903 = vst [vmem:[%s1274_s18 + $0x78] sm:$0xff] %v723_v60 }
 0x19a   : > { %v578_v3 = vpop.permute.xlu1 %577 }
 0x19b   : > { %v599_v19 = vsel %vm321_vm5, %v555_v18, %v578_v3 }
 0x19c   : > { %v725_v62 = vsub.f32 %v1234_v8, %v599_v19 }
 0x19e   : > { %905 = vst [vmem:[%s1274_s18 + $0xf8] sm:$0xff] %v725_v62 }
 0x1a2   : > { %v590_v21 = vpop.permute.xlu1 %589 }
 0x1a3   : > { %v602_v11 = vsel %vm321_vm5, %v561_v51, %v590_v21 }
 0x1a4   : > { %v728_v63 = vsub.f32 %v1246_v16, %v602_v11 }
 0x1a6   : > { %908 = vst [vmem:[%s1274_s18 + $0x1f0] sm:$0xff] %v728_v63 }
 0x1a7   : > { %1061 = shalt.err (!%p1058_p13)
}
 0x1a8   : > { %s1124_s5 = smov 128   ;;  %s1125_s15 = smov 8  }
 0x1a9   : > { %922 = dma.vmem_to_hbm [thread:$0]  (%p1187_p9), %s757_s27, 8192, %s759_s28, %s740_s9, %s1124_s5, %s1124_s5, %s1125_s15  }
 0x1aa PF: > { %s773_s16 = sand.u32 1, %s1096_s6   ;;  %p929_p0 = pnand %p846_p12, %p1194_p11 }
 0x1ab   : > { %s774_s17 = scalar_lea.sflag [#allocation4], %s773_s16 }
 0x1ac   : > { %p930_p1 = pneg %p929_p0 }
 0x1ae   : > { %1091 = dma.done.wait (%p930_p1), %s774_s17, 8192  }
 0x1af   : > { %1093 = vsyncadd (%p930_p1), %s774_s17, 4294959104  ;;  %s17_s11 = sadd.s32 1, %s1116_s11   ;;  %s1816_s6 = smov %s1100_s7 }
 0x1b0   : > { %p14_p2 = scmp.ge.s32.totalorder %s17_s11, 4   ;;  %s1817_s7 = smov %s1104_s8 }
 0x1b1   : > { %s1818_s8 = smov %s1192_s20  ;;  %s1819_s9 = smov %s1112_s10 }
 0x1b2   : > { %s1820_s10 = smov %s1822_s14  ;;  %16 = sbr.rel (!%p14_p2) target bundleno = 6 (0x6), region = 76 }
 0x1b7   :  { %780 = vsyncpa [#allocation3], 1 }
 0x1b8   :  { %782 = vsyncpa [#allocation3 + $0x1], 1 }
 0x1b9   :  { %783 = vsyncpa [#allocation4], 1 }
 0x1ba   :  { %785 = vsyncpa [#allocation4 + $0x1], 1 }

</bundles_post_ra>
